<compile_context>
chip_gen: v7x
topology: tpu7x:2x2x1
jax: 0.10.0
libtpu: 0.0.40
codegen_flags: <defaults>
</compile_context>

<pallas_src>
import jax
import jax.numpy as jnp
from jax.experimental import pallas as pl
from jax.experimental.pallas import tpu as pltpu


def _make_kernel(L, L_out, stride, same_channels):
    """Builds the per-batch kernel. Refs are 2-D (batch dim squeezed)."""

    def _strided_rows(ref, start):
        # rows start, start+stride, ... (L_out of them) from a 2-D ref.
        if stride == 1:
            return ref[pl.ds(start, L_out), :]
        return ref[pl.ds(start, L_out, stride), :]

    def compute(xp_ref, w1_ref, a1_ref, b1_ref, alpha_ref,
                w2_ref, a2_ref, b2_ref, ws_ref, as_ref, bs_ref,
                out_ref, hp_ref):
        cdt = w1_ref.dtype                       # matmul compute dtype (bf16/f32)
        xp = xp_ref[...]                         # (L+2, Cin) f32, zero padded

        # ---- conv1 (k=3, stride 1, pad 1) as ONE matmul (lane im2col) ----
        x3 = jnp.concatenate(
            [xp[0:L, :], xp[1:1 + L, :], xp[2:2 + L, :]], axis=1).astype(cdt)
        h = jnp.dot(x3, w1_ref[...], preferred_element_type=jnp.float32)  # (L, D)
        h = h * a1_ref[...] + b1_ref[...]                    # BN1 folded (f32)
        h = jnp.where(h >= 0, h, alpha_ref[...] * h)         # PReLU (per-channel)

        # ---- conv2 (k=3, stride s, pad 1): stage h, read strided taps ----
        D = hp_ref.shape[1]
        hp_ref[0:1, :] = jnp.zeros((1, D), jnp.float32)          # left pad row
        hp_ref[L + 1:L + 2, :] = jnp.zeros((1, D), jnp.float32)  # right pad row
        hp_ref[1:L + 1, :] = h                                   # center (offset-1 store)
        taps = jnp.concatenate(
            [_strided_rows(hp_ref, 0),
             _strided_rows(hp_ref, 1),
             _strided_rows(hp_ref, 2)], axis=1).astype(cdt)      # (L_out, 3*D)
        y = jnp.dot(taps, w2_ref[...], preferred_element_type=jnp.float32)
        y = y * a2_ref[...] + b2_ref[...]                        # BN2 folded (f32)

        # ---- shortcut: strided sample (MaxPool1d(1,s)) or 1x1 conv + BN ----
        xs = _strided_rows(xp_ref, 1)                            # x[j*stride], (L_out, Cin) f32
        if ws_ref is None:
            short = xs
        else:
            short = jnp.dot(xs.astype(cdt), ws_ref[...],
                            preferred_element_type=jnp.float32)
            short = short * as_ref[...] + bs_ref[...]

        out_ref[...] = (y + short).astype(out_ref.dtype)

    if same_channels:
        def kernel(xp_ref, w1_ref, a1_ref, b1_ref, alpha_ref,
                   w2_ref, a2_ref, b2_ref, out_ref, hp_ref):
            compute(xp_ref, w1_ref, a1_ref, b1_ref, alpha_ref,
                    w2_ref, a2_ref, b2_ref, None, None, None, out_ref, hp_ref)
        return kernel

    return compute


def bottleneck_res_pallas(x_ncw, p, stride, *, use_bf16=True):
    """x_ncw: (N, Cin, L) float32 in PyTorch NCW layout."""
    N, Cin, L = x_ncw.shape
    D = p['w1'].shape[0]
    same_channels = (Cin == D)
    L_out = (L - 1) // stride + 1
    eps = 1e-5
    cdt = jnp.bfloat16 if use_bf16 else jnp.float32

    # ---- glue: NCW -> NLC, halo pad for k=3, parameter folding ----
    x_nlc = jnp.transpose(x_ncw, (0, 2, 1))                  # (N, L, Cin)
    x_pad = jnp.pad(x_nlc, ((0, 0), (1, 1), (0, 0)))         # (N, L+2, Cin)

    # im2col-fused conv weights: (3*Cin, D) and (3*D, D), in compute dtype.
    w1cat = jnp.concatenate([p['w1'][:, :, t].T for t in range(3)], axis=0).astype(cdt)
    w2cat = jnp.concatenate([p['w2'][:, :, t].T for t in range(3)], axis=0).astype(cdt)

    def fold_bn(g, b, m, v):
        s = (g / jnp.sqrt(v + eps)).astype(jnp.float32)
        return s.reshape(1, -1), (b - m * s).reshape(1, -1).astype(jnp.float32)

    a1, b1 = fold_bn(p['g1'], p['b1'], p['m1'], p['v1'])
    a2, b2 = fold_bn(p['g2'], p['b2'], p['m2'], p['v2'])
    alpha = p['alpha'].reshape(1, -1).astype(jnp.float32)

    def rep(shape):
        return pl.BlockSpec(shape, lambda n: (0,) * len(shape))

    args = [x_pad, w1cat, a1, b1, alpha, w2cat, a2, b2]
    in_specs = [
        pl.BlockSpec((None, L + 2, Cin), lambda n: (n, 0, 0)),   # x (per batch)
        rep((3 * Cin, D)),                                       # conv1 fused weight
        rep((1, D)), rep((1, D)),                                # bn1 scale/bias
        rep((1, D)),                                             # prelu alpha
        rep((3 * D, D)),                                         # conv2 fused weight
        rep((1, D)), rep((1, D)),                                # bn2 scale/bias
    ]
    if not same_channels:
        ws = p['ws'][:, :, 0].T.astype(cdt)                      # (Cin, D)
        a_s, b_s = fold_bn(p['gs'], p['bs'], p['ms'], p['vs'])
        args += [ws, a_s, b_s]
        in_specs += [rep((Cin, D)), rep((1, D)), rep((1, D))]

    kernel = _make_kernel(L, L_out, stride, same_channels)

    out_nlc = pl.pallas_call(
        kernel,
        out_shape=jax.ShapeDtypeStruct((N, L_out, D), jnp.float32),
        grid=(N,),
        in_specs=in_specs,
        out_specs=pl.BlockSpec((None, L_out, D), lambda n: (n, 0, 0)),
        scratch_shapes=[pltpu.VMEM((L + 2, D), jnp.float32)],
        compiler_params=pltpu.CompilerParams(
            dimension_semantics=("parallel",)),                  # batch is independent
    )(*args)

    return jnp.transpose(out_nlc, (0, 2, 1))                     # back to NCW


# ---- pure-JAX reference (mirrors PyTorch forward, inference-mode BN) ----
def bottleneck_res_ref(x, p, stride):
    eps = 1e-5

    def conv(x, w, s, pad):
        return jax.lax.conv_general_dilated(
            x, w, (s,), [(pad, pad)], dimension_numbers=('NCH', 'OIH', 'NCH'))

    def bn(x, g, b, m, v):
        return ((x - m[None, :, None]) / jnp.sqrt(v[None, :, None] + eps)
                * g[None, :, None] + b[None, :, None])

    same = (x.shape[1] == p['w1'].shape[0])
    if same:
        short = x[:, :, ::stride]
    else:
        short = bn(conv(x, p['ws'], stride, 0), p['gs'], p['bs'], p['ms'], p['vs'])

    h = bn(conv(x, p['w1'], 1, 1), p['g1'], p['b1'], p['m1'], p['v1'])
    h = jnp.where(h >= 0, h, p['alpha'][None, :, None] * h)
    r = bn(conv(h, p['w2'], stride, 1), p['g2'], p['b2'], p['m2'], p['v2'])
    return r + short


def _make_params(key, Cin, D):
    ks = jax.random.split(key, 16)
    return {
        'w1':    jax.random.normal(ks[0], (D, Cin, 3), jnp.float32) * 0.1,
        'g1':    jax.random.uniform(ks[1], (D,), jnp.float32, 0.5, 1.5),
        'b1':    jax.random.normal(ks[2], (D,), jnp.float32) * 0.1,
        'm1':    jax.random.normal(ks[3], (D,), jnp.float32) * 0.1,
        'v1':    jax.random.uniform(ks[4], (D,), jnp.float32, 0.5, 1.5),
        'alpha': jnp.full((D,), 0.25, jnp.float32),
        'w2':    jax.random.normal(ks[5], (D, D, 3), jnp.float32) * 0.1,
        'g2':    jax.random.uniform(ks[6], (D,), jnp.float32, 0.5, 1.5),
        'b2':    jax.random.normal(ks[7], (D,), jnp.float32) * 0.1,
        'm2':    jax.random.normal(ks[8], (D,), jnp.float32) * 0.1,
        'v2':    jax.random.uniform(ks[9], (D,), jnp.float32, 0.5, 1.5),
        'ws':    jax.random.normal(ks[10], (D, Cin, 1), jnp.float32) * 0.1,
        'gs':    jax.random.uniform(ks[11], (D,), jnp.float32, 0.5, 1.5),
        'bs':    jax.random.normal(ks[12], (D,), jnp.float32) * 0.1,
        'ms':    jax.random.normal(ks[13], (D,), jnp.float32) * 0.1,
        'vs':    jax.random.uniform(ks[14], (D,), jnp.float32, 0.5, 1.5),
    }


if __name__ == "__main__":
    kA, kB, kxA, kxB = jax.random.split(jax.random.PRNGKey(0), 4)

    # Config A: projection shortcut (in_channel != depth), stride 2.
    N, Cin, D, L, stride = 2, 16, 32, 16, 2
    pA = _make_params(kA, Cin, D)
    xA = jax.random.normal(kxA, (N, Cin, L), jnp.float32)
    refA = bottleneck_res_ref(xA, pA, stride)

    outA = jax.block_until_ready(bottleneck_res_pallas(xA, pA, stride, use_bf16=False))
    assert outA.shape == refA.shape, (outA.shape, refA.shape)
    assert jnp.allclose(outA, refA, atol=1e-4, rtol=1e-4), \
        float(jnp.max(jnp.abs(outA - refA)))

    # bf16 matmul path (f32 accumulate + f32 epilogue): relaxed tolerance.
    outAb = jax.block_until_ready(bottleneck_res_pallas(xA, pA, stride, use_bf16=True))
    assert jnp.allclose(outAb, refA, atol=5e-2, rtol=5e-2), \
        float(jnp.max(jnp.abs(outAb - refA)))

    # Config B: identity (MaxPool1d(1, s)) shortcut, in_channel == depth, stride 1.
    N, Cin, D, L, stride = 2, 32, 32, 16, 1
    pB = _make_params(kB, Cin, D)
    xB = jax.random.normal(kxB, (N, Cin, L), jnp.float32)
    refB = bottleneck_res_ref(xB, pB, stride)
    outB = jax.block_until_ready(bottleneck_res_pallas(xB, pB, stride, use_bf16=False))
    assert outB.shape == refB.shape, (outB.shape, refB.shape)
    assert jnp.allclose(outB, refB, atol=1e-4, rtol=1e-4), \
        float(jnp.max(jnp.abs(outB - refB)))

    print("KERNEL_OK")
</pallas_src>

<mosaic_0001>
module attributes {stable_mosaic.version = 11 : i64} {
  func.func @compute(%arg0: i32, %arg1: memref<1x18x16xf32, #tpu.memory_space<vmem>>, %arg2: memref<48x32xf32, #tpu.memory_space<vmem>>, %arg3: memref<1x32xf32, #tpu.memory_space<vmem>>, %arg4: memref<1x32xf32, #tpu.memory_space<vmem>>, %arg5: memref<1x32xf32, #tpu.memory_space<vmem>>, %arg6: memref<96x32xf32, #tpu.memory_space<vmem>>, %arg7: memref<1x32xf32, #tpu.memory_space<vmem>>, %arg8: memref<1x32xf32, #tpu.memory_space<vmem>>, %arg9: memref<16x32xf32, #tpu.memory_space<vmem>>, %arg10: memref<1x32xf32, #tpu.memory_space<vmem>>, %arg11: memref<1x32xf32, #tpu.memory_space<vmem>>, %arg12: memref<1x8x32xf32, #tpu.memory_space<vmem>>, %arg13: memref<18x32xf32, #tpu.memory_space<vmem>>) attributes {dimension_semantics = [#tpu.dimension_semantics<parallel>], iteration_bounds = array<i64: 2>, scalar_prefetch = 0 : i64, scratch_operands = 1 : i64, tpu.core_type = #tpu.core_type<tc>, window_params = [{transform_indices = @transform_0, window_bounds = array<i64: 1, 18, 16>}, {pipeline_mode = #tpu.pipeline_mode<synchronous>, transform_indices = @transform_1, window_bounds = array<i64: 48, 32>}, {pipeline_mode = #tpu.pipeline_mode<synchronous>, transform_indices = @transform_2, window_bounds = array<i64: 1, 32>}, {pipeline_mode = #tpu.pipeline_mode<synchronous>, transform_indices = @transform_3, window_bounds = array<i64: 1, 32>}, {pipeline_mode = #tpu.pipeline_mode<synchronous>, transform_indices = @transform_4, window_bounds = array<i64: 1, 32>}, {pipeline_mode = #tpu.pipeline_mode<synchronous>, transform_indices = @transform_5, window_bounds = array<i64: 96, 32>}, {pipeline_mode = #tpu.pipeline_mode<synchronous>, transform_indices = @transform_6, window_bounds = array<i64: 1, 32>}, {pipeline_mode = #tpu.pipeline_mode<synchronous>, transform_indices = @transform_7, window_bounds = array<i64: 1, 32>}, {pipeline_mode = #tpu.pipeline_mode<synchronous>, transform_indices = @transform_8, window_bounds = array<i64: 16, 32>}, {pipeline_mode = #tpu.pipeline_mode<synchronous>, transform_indices = @transform_9, window_bounds = array<i64: 1, 32>}, {pipeline_mode = #tpu.pipeline_mode<synchronous>, transform_indices = @transform_10, window_bounds = array<i64: 1, 32>}, {transform_indices = @transform_11, window_bounds = array<i64: 1, 8, 32>}]} {
    %c0 = arith.constant 0 : index
    %c0_0 = arith.constant 0 : index
    %c0_1 = arith.constant 0 : index
    %0 = vector.load %arg1[%c0, %c0_0, %c0_1] : memref<1x18x16xf32, #tpu.memory_space<vmem>>, vector<1x18x16xf32>
    %1 = vector.shape_cast %0 : vector<1x18x16xf32> to vector<18x16xf32>
    %2 = vector.extract_strided_slice %1 {offsets = [0, 0], sizes = [16, 16], strides = [1, 1]} : vector<18x16xf32> to vector<16x16xf32>
    %3 = vector.extract_strided_slice %1 {offsets = [1, 0], sizes = [16, 16], strides = [1, 1]} : vector<18x16xf32> to vector<16x16xf32>
    %4 = vector.extract_strided_slice %1 {offsets = [2, 0], sizes = [16, 16], strides = [1, 1]} : vector<18x16xf32> to vector<16x16xf32>
    %5 = tpu.concatenate %2, %3, %4 in 1 : vector<16x16xf32>, vector<16x16xf32>, vector<16x16xf32> -> vector<16x48xf32>
    %c0_2 = arith.constant 0 : index
    %c0_3 = arith.constant 0 : index
    %6 = vector.load %arg2[%c0_2, %c0_3] : memref<48x32xf32, #tpu.memory_space<vmem>>, vector<48x32xf32>
    %cst = arith.constant dense<0.000000e+00> : vector<16x32xf32>
    %7 = tpu.matmul %5, %6, %cst {dimension_numbers = #tpu.dot_dimension_numbers<[1], [0], [0], [1], [0, 0, 1, 1], [], []>} : vector<16x48xf32>, vector<48x32xf32>, vector<16x32xf32> -> vector<16x32xf32>
    %c0_4 = arith.constant 0 : index
    %c0_5 = arith.constant 0 : index
    %8 = vector.load %arg3[%c0_4, %c0_5] : memref<1x32xf32, #tpu.memory_space<vmem>>, vector<1x32xf32>
    %9 = vector.broadcast %8 : vector<1x32xf32> to vector<16x32xf32>
    %10 = arith.mulf %7, %9 : vector<16x32xf32>
    %c0_6 = arith.constant 0 : index
    %c0_7 = arith.constant 0 : index
    %11 = vector.load %arg4[%c0_6, %c0_7] : memref<1x32xf32, #tpu.memory_space<vmem>>, vector<1x32xf32>
    %12 = vector.broadcast %11 : vector<1x32xf32> to vector<16x32xf32>
    %13 = arith.addf %10, %12 : vector<16x32xf32>
    %cst_8 = arith.constant 0.000000e+00 : f32
    %14 = vector.broadcast %cst_8 : f32 to vector<16x32xf32>
    %15 = arith.cmpf oge, %13, %14 : vector<16x32xf32>
    %c0_9 = arith.constant 0 : index
    %c0_10 = arith.constant 0 : index
    %16 = vector.load %arg5[%c0_9, %c0_10] : memref<1x32xf32, #tpu.memory_space<vmem>>, vector<1x32xf32>
    %17 = vector.broadcast %16 : vector<1x32xf32> to vector<16x32xf32>
    %18 = arith.mulf %17, %13 : vector<16x32xf32>
    %19 = arith.select %15, %13, %18 : vector<16x32xi1>, vector<16x32xf32>
    %cst_11 = arith.constant 0.000000e+00 : f32
    %20 = vector.broadcast %cst_11 : f32 to vector<1x32xf32>
    %c0_12 = arith.constant 0 : index
    %c0_13 = arith.constant 0 : index
    %21 = vector.load %arg13[%c0_12, %c0_13] : memref<18x32xf32, #tpu.memory_space<vmem>>, vector<1x32xf32>
    tpu.vector_store %arg13[%c0_12, %c0_13], %20 {strides = array<i32>} : memref<18x32xf32, #tpu.memory_space<vmem>>, vector<1x32xf32>,
    %cst_14 = arith.constant 0.000000e+00 : f32
    %22 = vector.broadcast %cst_14 : f32 to vector<1x32xf32>
    %c17 = arith.constant 17 : index
    %c0_15 = arith.constant 0 : index
    %23 = vector.load %arg13[%c17, %c0_15] : memref<18x32xf32, #tpu.memory_space<vmem>>, vector<1x32xf32>
    tpu.vector_store %arg13[%c17, %c0_15], %22 {strides = array<i32>} : memref<18x32xf32, #tpu.memory_space<vmem>>, vector<1x32xf32>,
    %c1 = arith.constant 1 : index
    %c0_16 = arith.constant 0 : index
    %24 = vector.load %arg13[%c1, %c0_16] : memref<18x32xf32, #tpu.memory_space<vmem>>, vector<16x32xf32>
    tpu.vector_store %arg13[%c1, %c0_16], %19 {strides = array<i32>} : memref<18x32xf32, #tpu.memory_space<vmem>>, vector<16x32xf32>,
    %c0_17 = arith.constant 0 : index
    %c0_18 = arith.constant 0 : index
    %25 = tpu.strided_load %arg13[%c0_17, %c0_18] {strides = array<i32: 2, 1>} : memref<18x32xf32, #tpu.memory_space<vmem>>, vector<8x32xf32>
    %c1_19 = arith.constant 1 : index
    %c0_20 = arith.constant 0 : index
    %26 = tpu.strided_load %arg13[%c1_19, %c0_20] {strides = array<i32: 2, 1>} : memref<18x32xf32, #tpu.memory_space<vmem>>, vector<8x32xf32>
    %c2 = arith.constant 2 : index
    %c0_21 = arith.constant 0 : index
    %27 = tpu.strided_load %arg13[%c2, %c0_21] {strides = array<i32: 2, 1>} : memref<18x32xf32, #tpu.memory_space<vmem>>, vector<8x32xf32>
    %28 = tpu.concatenate %25, %26, %27 in 1 : vector<8x32xf32>, vector<8x32xf32>, vector<8x32xf32> -> vector<8x96xf32>
    %c0_22 = arith.constant 0 : index
    %c0_23 = arith.constant 0 : index
    %29 = vector.load %arg6[%c0_22, %c0_23] : memref<96x32xf32, #tpu.memory_space<vmem>>, vector<96x32xf32>
    %cst_24 = arith.constant dense<0.000000e+00> : vector<8x32xf32>
    %30 = tpu.matmul %28, %29, %cst_24 {dimension_numbers = #tpu.dot_dimension_numbers<[1], [0], [0], [1], [0, 0, 1, 1], [], []>} : vector<8x96xf32>, vector<96x32xf32>, vector<8x32xf32> -> vector<8x32xf32>
    %c0_25 = arith.constant 0 : index
    %c0_26 = arith.constant 0 : index
    %31 = vector.load %arg7[%c0_25, %c0_26] : memref<1x32xf32, #tpu.memory_space<vmem>>, vector<1x32xf32>
    %32 = vector.broadcast %31 : vector<1x32xf32> to vector<8x32xf32>
    %33 = arith.mulf %30, %32 : vector<8x32xf32>
    %c0_27 = arith.constant 0 : index
    %c0_28 = arith.constant 0 : index
    %34 = vector.load %arg8[%c0_27, %c0_28] : memref<1x32xf32, #tpu.memory_space<vmem>>, vector<1x32xf32>
    %35 = vector.broadcast %34 : vector<1x32xf32> to vector<8x32xf32>
    %36 = arith.addf %33, %35 : vector<8x32xf32>
    %c0_29 = arith.constant 0 : index
    %c1_30 = arith.constant 1 : index
    %c0_31 = arith.constant 0 : index
    %37 = tpu.strided_load %arg1[%c0_29, %c1_30, %c0_31] {strides = array<i32: 1, 2, 1>} : memref<1x18x16xf32, #tpu.memory_space<vmem>>, vector<1x8x16xf32>
    %38 = vector.shape_cast %37 : vector<1x8x16xf32> to vector<8x16xf32>
    %c0_32 = arith.constant 0 : index
    %c0_33 = arith.constant 0 : index
    %39 = vector.load %arg9[%c0_32, %c0_33] : memref<16x32xf32, #tpu.memory_space<vmem>>, vector<16x32xf32>
    %cst_34 = arith.constant dense<0.000000e+00> : vector<8x32xf32>
    %40 = tpu.matmul %38, %39, %cst_34 {dimension_numbers = #tpu.dot_dimension_numbers<[1], [0], [0], [1], [0, 0, 1, 1], [], []>} : vector<8x16xf32>, vector<16x32xf32>, vector<8x32xf32> -> vector<8x32xf32>
    %c0_35 = arith.constant 0 : index
    %c0_36 = arith.constant 0 : index
    %41 = vector.load %arg10[%c0_35, %c0_36] : memref<1x32xf32, #tpu.memory_space<vmem>>, vector<1x32xf32>
    %42 = vector.broadcast %41 : vector<1x32xf32> to vector<8x32xf32>
    %43 = arith.mulf %40, %42 : vector<8x32xf32>
    %c0_37 = arith.constant 0 : index
    %c0_38 = arith.constant 0 : index
    %44 = vector.load %arg11[%c0_37, %c0_38] : memref<1x32xf32, #tpu.memory_space<vmem>>, vector<1x32xf32>
    %45 = vector.broadcast %44 : vector<1x32xf32> to vector<8x32xf32>
    %46 = arith.addf %43, %45 : vector<8x32xf32>
    %47 = arith.addf %36, %46 : vector<8x32xf32>
    %c0_39 = arith.constant 0 : index
    %c0_40 = arith.constant 0 : index
    %c0_41 = arith.constant 0 : index
    %48 = vector.load %arg12[%c0_39, %c0_40, %c0_41] : memref<1x8x32xf32, #tpu.memory_space<vmem>>, vector<1x8x32xf32>
    %49 = vector.shape_cast %48 : vector<1x8x32xf32> to vector<8x32xf32>
    %50 = vector.shape_cast %47 : vector<8x32xf32> to vector<1x8x32xf32>
    tpu.vector_store %arg12[%c0_39, %c0_40, %c0_41], %50 {strides = array<i32>} : memref<1x8x32xf32, #tpu.memory_space<vmem>>, vector<1x8x32xf32>,
    return
  }
  func.func @transform_0(%arg0: i32) -> (i32, i32, i32) {
    %c0_i32 = arith.constant 0 : i32
    %c0_i32_0 = arith.constant 0 : i32
    %c0_i32_1 = arith.constant 0 : i32
    return %arg0, %c0_i32, %c0_i32_0 : i32, i32, i32
  }
  func.func @transform_1(%arg0: i32) -> (i32, i32) {
    %c0_i32 = arith.constant 0 : i32
    %c0_i32_0 = arith.constant 0 : i32
    %c0_i32_1 = arith.constant 0 : i32
    return %c0_i32, %c0_i32_0 : i32, i32
  }
  func.func @transform_2(%arg0: i32) -> (i32, i32) {
    %c0_i32 = arith.constant 0 : i32
    %c0_i32_0 = arith.constant 0 : i32
    %c0_i32_1 = arith.constant 0 : i32
    return %c0_i32, %c0_i32_0 : i32, i32
  }
  func.func @transform_3(%arg0: i32) -> (i32, i32) {
    %c0_i32 = arith.constant 0 : i32
    %c0_i32_0 = arith.constant 0 : i32
    %c0_i32_1 = arith.constant 0 : i32
    return %c0_i32, %c0_i32_0 : i32, i32
  }
  func.func @transform_4(%arg0: i32) -> (i32, i32) {
    %c0_i32 = arith.constant 0 : i32
    %c0_i32_0 = arith.constant 0 : i32
    %c0_i32_1 = arith.constant 0 : i32
    return %c0_i32, %c0_i32_0 : i32, i32
  }
  func.func @transform_5(%arg0: i32) -> (i32, i32) {
    %c0_i32 = arith.constant 0 : i32
    %c0_i32_0 = arith.constant 0 : i32
    %c0_i32_1 = arith.constant 0 : i32
    return %c0_i32, %c0_i32_0 : i32, i32
  }
  func.func @transform_6(%arg0: i32) -> (i32, i32) {
    %c0_i32 = arith.constant 0 : i32
    %c0_i32_0 = arith.constant 0 : i32
    %c0_i32_1 = arith.constant 0 : i32
    return %c0_i32, %c0_i32_0 : i32, i32
  }
  func.func @transform_7(%arg0: i32) -> (i32, i32) {
    %c0_i32 = arith.constant 0 : i32
    %c0_i32_0 = arith.constant 0 : i32
    %c0_i32_1 = arith.constant 0 : i32
    return %c0_i32, %c0_i32_0 : i32, i32
  }
  func.func @transform_8(%arg0: i32) -> (i32, i32) {
    %c0_i32 = arith.constant 0 : i32
    %c0_i32_0 = arith.constant 0 : i32
    %c0_i32_1 = arith.constant 0 : i32
    return %c0_i32, %c0_i32_0 : i32, i32
  }
  func.func @transform_9(%arg0: i32) -> (i32, i32) {
    %c0_i32 = arith.constant 0 : i32
    %c0_i32_0 = arith.constant 0 : i32
    %c0_i32_1 = arith.constant 0 : i32
    return %c0_i32, %c0_i32_0 : i32, i32
  }
  func.func @transform_10(%arg0: i32) -> (i32, i32) {
    %c0_i32 = arith.constant 0 : i32
    %c0_i32_0 = arith.constant 0 : i32
    %c0_i32_1 = arith.constant 0 : i32
    return %c0_i32, %c0_i32_0 : i32, i32
  }
  func.func @transform_11(%arg0: i32) -> (i32, i32, i32) {
    %c0_i32 = arith.constant 0 : i32
    %c0_i32_0 = arith.constant 0 : i32
    %c0_i32_1 = arith.constant 0 : i32
    return %arg0, %c0_i32, %c0_i32_0 : i32, i32, i32
  }
}

</mosaic_0001>

<bundles_post_ra>
// kernel: tpu_custom_call.1
= control target key start
LH: loop header
LB: loop body
LE: loop exit
PB: predicated region body
PF: predicated region fallthrough
CT: control target
= control target key end

     0   :  { %s1339_s0 = inlined_call_operand.vmem [shape: f32[2,18,16], index: 0, kind: input, shape index: {}]   ;;  %s1340_s1 = inlined_call_operand.vmem [shape: f32[48,32], index: 1, kind: input, shape index: {}]   ;;  %s1341_s2 = inlined_call_operand.vmem [shape: f32[1,32], index: 2, kind: input, shape index: {}]   ;;  %s1342_s3 = inlined_call_operand.vmem [shape: f32[1,32], index: 3, kind: input, shape index: {}]   ;;  %s1343_s4 = inlined_call_operand.vmem [shape: f32[1,32], index: 4, kind: input, shape index: {}]   ;;  %s1344_s5 = inlined_call_operand.vmem [shape: f32[96,32], index: 5, kind: input, shape index: {}]   ;;  %s1345_s6 = inlined_call_operand.vmem [shape: f32[1,32], index: 6, kind: input, shape index: {}]   ;;  %s1346_s7 = inlined_call_operand.vmem [shape: f32[1,32], index: 7, kind: input, shape index: {}]   ;;  %s1347_s8 = inlined_call_operand.vmem [shape: f32[16,32], index: 8, kind: input, shape index: {}]   ;;  %s1348_s9 = inlined_call_operand.vmem [shape: f32[1,32], index: 9, kind: input, shape index: {}]   ;;  %s1349_s10 = inlined_call_operand.vmem [shape: f32[1,32], index: 10, kind: input, shape index: {}]   ;;  %s1350_s11 = inlined_call_operand.hbm [shape: f32[2,8,32], index: 11, kind: output, shape index: {}]  }
   0x1   :  { %1352 = sst [smem:[#allocation7_spill]] %s1339_s0 }
   0x2   :  { %16 = vsyncpa [#allocation4], 0 }
   0x3   :  { %18 = vsyncpa [#allocation4 + $0x1], 0  ;;  %s1136_s17 = smov 0   ;;  %s1138_s18 = smov 0  }
   0x4   :  { %s1140_s19 = smov 0   ;;  %s1142_s20 = smov 0  }
   0x5 LB: > { %s1157_s21 = sadd.s32 4294967295, %s1067_s20   ;;  %s831_s22 = sadd.s32 4294967294, %s1067_s20   ;;  %s1067_s20 = sphi %s1142_s20, %s1362_s20   ;;  %s1063_s19 = sphi %s1140_s19, %s1361_s19   ;;  %s1059_s18 = sphi %s1138_s18, %s1360_s18   ;;  %s1055_s17 = sphi %s1136_s17, %s1359_s17  }
   0x6   : > { %s1161_s23 = sadd.s32 1, %s1067_s20   ;;  %s267_s24 = sadd.s32 1, %s1063_s19 }
   0x7   : > { %s264_s25 = ssub.s32 %s1067_s20, %s1161_s23  ;;  %p277_p0 = scmp.ne.s32.totalorder %s1063_s19, %s1059_s18 }
   0x8   : > { %p265_p1 = scmp.eq.s32.totalorder %s264_s25, 0  ;;  %p278_p2 = scmp.eq.s32.totalorder %s1157_s21, 1 }
   0x9   : > { %p283_p3 = scmp.ne.s32.totalorder %s1059_s18, %s1055_s17  ;;  %p284_p4 = scmp.eq.s32.totalorder %s831_s22, 1 }
   0xa   : > { %s1172_s26 = scalar_select %p265_p1, %s1063_s19, %s267_s24  }
   0xb   : > { %p1174_p5 = por %p278_p2, %p277_p0  ;;  %p1178_p6 = por %p284_p4, %p283_p3 }
   0xc   : > { %1353 = sst [smem:[#allocation6_spill]] %s1172_s26  ;;  %p834_p7 = scmp.ge.s32.totalorder %s1067_s20, 1 }
   0xd   : > { %p340_p8 = scmp.lt.s32.totalorder %s1067_s20, 3 }
   0xf   : > { %p341_p9 = pnand %p834_p7, %p340_p8 }
  0x10   : > { %p380_p10 = scmp.lt.s32.totalorder (!%p341_p9), %s1157_s21, 1  ;;  %v421_v0 = vld [vmem:[%s1340_s1] sm:$0xff] (!%p341_p9)  ;;  %v422_v1 = vld [vmem:[%s1340_s1 + $0x8] sm:$0xff] (!%p341_p9)  ;;  %v423_v3 = vld [vmem:[%s1340_s1 + $0x10] sm:$0xff] (!%p341_p9)  ;;  %s1356_s0 = sld [smem:[#allocation7_spill]] (!%p341_p9)  ;;  %vm391_vm0 = vcmask (!%p341_p9), 1046528  }
  0x11   : > { %344 = sbr.rel (%p341_p9) target bundleno = 731 (0x2db), region = 64  ;;  %v926_v2 = vpack.c.bf16 (!%p341_p9), %v422_v1, %v421_v0  ;;  %v424_v4 = vld [vmem:[%s1340_s1 + $0x18] sm:$0xff] (!%p341_p9)  ;;  %v425_v6 = vld [vmem:[%s1340_s1 + $0x20] sm:$0xff] (!%p341_p9)  ;;  %v426_v7 = vld [vmem:[%s1340_s1 + $0x28] sm:$0xff] (!%p341_p9)  ;;  %vm403_vm1 = vcmask (!%p341_p9), 1045504   ;;  %s1069_s26 = smov (!%p341_p9), 16  }
  0x12   : > { %v930_v5 = vpack.c.bf16 (!%p341_p9), %v424_v4, %v423_v3  ;;  %v934_v8 = vpack.c.bf16 (!%p341_p9), %v426_v7, %v425_v6  ;;  %s1351_s16 = smov (!%p341_p9), 32   ;;  %vm415_vm2 = vcmask (!%p341_p9), 130048   ;;  %vm418_vm3 = vcmask (!%p341_p9), 261120   ;;  %v561_v31 = vld [vmem:[%s1344_s5] sm:$0xff] (!%p341_p9)  ;;  %v562_v32 = vld [vmem:[%s1344_s5 + $0x8] sm:$0xff] (!%p341_p9)  ;;  %v563_v33 = vld [vmem:[%s1344_s5 + $0x10] sm:$0xff] (!%p341_p9) }
  0x13   : > { %927 = vmatprep.subr.bf16.mxu0 (!%p341_p9), %v926_v2  ;;  %vm427_vm4 = vcmask (!%p341_p9), 392192   ;;  %vm540_vm5 = vcmask (!%p341_p9), 253952   ;;  %v1071_v30 = vmov (!%p341_p9), 0.0   ;;  %v1072_v34 = vmov (!%p341_p9), 0.0|0.0   ;;  %v564_v36 = vld [vmem:[%s1344_s5 + $0x18] sm:$0xff] (!%p341_p9)  ;;  %v665_v38 = vld [vmem:[%s1347_s8] sm:$0xff] (!%p341_p9) }
  0x14   : > { %929 = vmatpush3.bf16.msra.mxu0 (!%p341_p9), %v926_v2  ;;  %541 = vst.msk [vmem:[#allocation2] sm:$0x1] (!%p341_p9), %vm540_vm5, %v1071_v30  ;;  %938 = vmatprep.subr.bf16.mxu1 (!%p341_p9), %v1072_v34  ;;  %v939_v35 = vpack.c.bf16 (!%p341_p9), %v562_v32, %v561_v31  ;;  %v942_v37 = vpack.c.bf16 (!%p341_p9), %v564_v36, %v563_v33  ;;  %v666_v39 = vld [vmem:[%s1347_s8 + $0x8] sm:$0xff] (!%p341_p9)  ;;  %v565_v40 = vld [vmem:[%s1344_s5 + $0x20] sm:$0xff] (!%p341_p9)  ;;  %v567_v44 = vld [vmem:[%s1344_s5 + $0x30] sm:$0xff] (!%p341_p9)  ;;  %vm1073_vm6 = vmmov (!%p341_p9), 0  }
  0x15   : > { %931 = vmatprep.subr.bf16.mxu0 (!%p341_p9), %v930_v5  ;;  %v566_v41 = vld [vmem:[%s1344_s5 + $0x28] sm:$0xff] (!%p341_p9)  ;;  %v957_v42 = vpack.c.bf16 (!%p341_p9), %v666_v39, %v665_v38  ;;  %v568_v45 = vld [vmem:[%s1344_s5 + $0x38] sm:$0xff] (!%p341_p9)  ;;  %v569_v47 = vld [vmem:[%s1344_s5 + $0x40] sm:$0xff] (!%p341_p9)  ;;  %916 = vmatprep.mubr.msk.f32.mxu1 (!%p341_p9), %vm1073_vm6, %v1071_v30  ;;  %s1074_s30 = smov (!%p341_p9), 64   ;;  %vm559_vm9 = vcmask (!%p341_p9), 523264   ;;  %vm573_vm10 = vcmask (!%p341_p9), 785408  }
  0x16   : > { %940 = vmatpush3.bf16.msra.mxu1 (!%p341_p9), %v939_v35  ;;  %v945_v43 = vpack.c.bf16 (!%p341_p9), %v566_v41, %v565_v40  ;;  %v948_v46 = vpack.c.bf16 (!%p341_p9), %v568_v45, %v567_v44  ;;  %v570_v48 = vld [vmem:[%s1344_s5 + $0x48] sm:$0xff] (!%p341_p9)  ;;  %v571_v50 = vld [vmem:[%s1344_s5 + $0x50] sm:$0xff] (!%p341_p9)  ;;  %v572_v51 = vld [vmem:[%s1344_s5 + $0x58] sm:$0xff] (!%p341_p9) }
  0x17   : > { %941 = vmatprep.subr.bf16.mxu1 (!%p341_p9), %v1072_v34  ;;  %v951_v49 = vpack.c.bf16 (!%p341_p9), %v570_v48, %v569_v47  ;;  %v954_v52 = vpack.c.bf16 (!%p341_p9), %v572_v51, %v571_v50  ;;  %v839_v53 = vld [vmem:[%s1341_s2] ss:$0 sm:$0xff] (!%p341_p9) }
  0x18   : > { %s381_s24 = scalar_select %p380_p10, %s1157_s21, 1  ;;  %933 = vmatpush3.bf16.msra.mxu0 %v930_v5  ;;  %v840_v55 = vld [vmem:[%s1342_s3] ss:$0 sm:$0xff] }
  0x19   : > { %935 = vmatprep.subr.bf16.mxu0 %v934_v8  ;;  %v841_v58 = vld [vmem:[%s1343_s4] ss:$0 sm:$0xff] }
  0x1a   : > { %s959_s12 = smul.u32 24, %s381_s24  ;;  %943 = vmatpush3.bf16.msra.mxu1 %v942_v37 }
  0x1b   : > { %944 = vmatprep.subr.bf16.mxu1 %v1072_v34 }
  0x1c   : > { %s1207_s15 = scalar_lea.vmem %s1356_s0, %s959_s12  ;;  %937 = vmatpush3.bf16.msra.mxu0 %v934_v8  ;;  %s1357_s12 = smov 32  }
  0x1d   : > { %v385_v9 = vld [vmem:[%s1207_s15] sm:$0xff]  ;;  %v386_v10 = vld [vmem:[%s1207_s15 + $0x8] sm:$0xff]  ;;  %v387_v11 = vld [vmem:[%s1207_s15 + $0x10] sm:$0x3]  ;;  %956 = vmatprep.subr.bf16.mxu0 %v1072_v34 }
  0x1e   : > { %v392_v12 = vrot.slane %v385_v9, 1  ;;  %v393_v13 = vrot.slane %v386_v10, 1  ;;  %v404_v14 = vrot.slane %v385_v9, 2  ;;  %v405_v15 = vrot.slane %v386_v10, 2  ;;  %946 = vmatpush3.bf16.msra.mxu1 %v945_v43  ;;  %v845_v62 = vld [vmem:[%s1207_s15 + $0x1] ss:$2 sm:$0xff] }
  0x1f   : > { %v395_v16 = vrot.slane %v387_v11, 1  ;;  %v407_v17 = vrot.slane %v387_v11, 2  ;;  %947 = vmatprep.subr.bf16.mxu1 %v1072_v34  ;;  %s377_s15 = sand.u32 1, %s1059_s18  }
  0x20   : > { %v394_v18 = vsel %vm391_vm0, %v392_v12, %v393_v13  ;;  %v406_v19 = vsel %vm403_vm1, %v404_v14, %v405_v15  ;;  %v847_v12 = vld [vmem:[%s1348_s9] ss:$0 sm:$0xff]  ;;  %s759_s25 = scalar_lea.sflag [#allocation4], %s377_s15 }
  0x21   : > { %397 = vrot.lane.b32.xlu0 %v394_v18, %s1069_s26  ;;  %409 = vrot.lane.b32.xlu1 %v406_v19, %s1351_s16  ;;  %v396_v20 = vsel %vm391_vm0, %v393_v13, %v395_v16  ;;  %v408_v21 = vsel %vm403_vm1, %v405_v15, %v407_v17  ;;  %v848_v14 = vld [vmem:[%s1349_s10] ss:$0 sm:$0xff] }
  0x22   : > { %949 = vmatpush3.bf16.msra.mxu1 %v948_v46  ;;  %v843_v15 = vld [vmem:[%s1345_s6] ss:$0 sm:$0xff] }
  0x23   : > { %950 = vmatprep.subr.bf16.mxu1 %v1072_v34  ;;  %v844_v17 = vld [vmem:[%s1346_s7] ss:$0 sm:$0xff] }
  0x25   : > { %399 = vrot.lane.b32.xlu0 %v396_v20, %s1069_s26  ;;  %411 = vrot.lane.b32.xlu1 %v408_v21, %s1351_s16  ;;  %s835_s26 = sshll.u32 %s377_s15, 3 }
  0x26   : > { %952 = vmatpush3.bf16.msra.mxu1 %v951_v49  ;;  %s379_s13 = scalar_lea.vmem [#allocation3], %s835_s26 }
  0x27   : > { %953 = vmatprep.subr.bf16.mxu1 %v1072_v34  ;;  %s772_s14 = sshll.u32 %s379_s13, 4  ;;  %s1298_s14 = int_to_ptr.vmem [resolvable:$true] %s772_s14 }
  0x28   : > { %s1005_s16 = scalar_lea.vmem %s1298_s14, 128 }
  0x29   : > { %p1006_p11 = scmp.ne.s32.totalorder %s1298_s14, %s1005_s16 }
  0x2a   : > { %955 = vmatpush3.bf16.msra.mxu1 %v954_v52 }
  0x2b   : > { %p1007_p12 = pnand %p1006_p11, %p1174_p5 }
  0x2d   : > { %p1008_p13 = pneg %p1007_p12 }
  0x93   : > { %v398_v22 = vpop.permute.xlu0 %397  ;;  %v410_v23 = vpop.permute.xlu1 %409 }
  0x94   : > { %v416_v24 = vsel %vm415_vm2, %v385_v9, %v398_v22 }
  0x95   : > { %v419_v25 = vsel %vm418_vm3, %v416_v24, %v410_v23 }
  0x96   : > { %889 = vmatprep.mubr.msk.f32.mxu0 %vm427_vm4, %v419_v25 }
  0x97   : > { %v400_v26 = vpop.permute.xlu0 %399  ;;  %v412_v27 = vpop.permute.xlu1 %411 }
  0x98   : > { %v417_v28 = vsel %vm415_vm2, %v386_v10, %v400_v26 }
  0x99   : > { %v420_v29 = vsel %vm418_vm3, %v417_v28, %v412_v27 }
  0x9a   : > { %890 = vmatmul.mubr.msk.f32.vlgmr.msra.gmra.mrb[0].mxu0 %vm427_vm4, %v420_v29 }
  0x9b   : > { %958 = vmatpush3.bf16.msra.mxu0 %v957_v42  ;;  %923 = vmatprep.mubr.msk.f32.mxu0 %vm1073_vm6, %v1071_v30 }
  0x9e   : > { %924 = vmatmul.mubr.msk.f32.vlgmr.msra.gmra.mrb[2].mxu0 %vm415_vm2, %v845_v62 }
 0x16d   : > { %v891_v54 = vpop.f32.mrb[0].mxu0 }
 0x16e   : > { %v517_v56 = vmul.f32 %v891_v54, %v839_v53  ;;  %v500_v57 = vpop.f32.mrb[1].mxu0 }
 0x16f   : > { %v516_v59 = vmul.f32 %v839_v53, %v500_v57 }
 0x170   : > { %v526_v60 = vadd.f32 %v840_v55, %v517_v56 }
 0x171   : > { %v525_v61 = vadd.f32 %v840_v55, %v516_v59  ;;  %v736_v10 = vpop.f32.mrb[2].mxu0 }
 0x172   : > { %vm528_vm7 = vcmp.ge.f32.partialorder %v526_v60, 0.0  ;;  %v537_v63 = vmul.f32 %v841_v58, %v526_v60  ;;  %v925_v11 = vpop.f32.mrb[3].mxu0  ;;  %v747_v13 = vmul.f32 %v847_v12, %v736_v10 }
 0x173   : > { %vm527_vm8 = vcmp.ge.f32.partialorder %v525_v61, 0.0  ;;  %v536_v0 = vmul.f32 %v841_v58, %v525_v61 }
 0x174   : > { %v539_v1 = vsel %vm528_vm7, %v526_v60, %v537_v63  ;;  %v755_v18 = vadd.f32 %v848_v14, %v747_v13 }
 0x175   : > { %544 = vst.msk [vmem:[#allocation2 + $0x9] sm:$0xff] %vm418_vm3, %v539_v1  ;;  %v538_v2 = vsel %vm527_vm8, %v525_v61, %v536_v0 }
 0x176   : > { %543 = vst.msk [vmem:[#allocation2 + $0x1] sm:$0xff] %vm418_vm3, %v538_v2 }
 0x17d   : > { %v549_v3 = vld [vmem:[#allocation2 + $0x2] ss:$2 sm:$0xff]  ;;  %v547_v4 = vld [vmem:[#allocation2 + $0x1] ss:$2 sm:$0xff] }
 0x17e   : > { %555 = vrot.lane.b32.xlu1 %v549_v3, %s1074_s30  ;;  %551 = vrot.lane.b32.xlu0 %v547_v4, %s1357_s12  ;;  %v545_v7 = vld [vmem:[#allocation2] ss:$2 sm:$0xff]  ;;  %s850_s12 = sshll.u32 %s1157_s21, 7  ;;  %s1075_s21 = smov [#allocation3]  }
 0x17f   : > { %s1296_s0 = scalar_lea.hbm %s1350_s11, %s850_s12  ;;  %s1009_s26 = sshll.u32 %s1075_s21, 4  ;;  %s1010_s26 = int_to_ptr.vmem [resolvable:$false] %s1009_s26 }
 0x180   : > { %s1011_s29 = scalar_lea.vmem %s1010_s26, 256  ;;  %p1012_p0 = scmp.lt.s32.totalorder %s1298_s14, %s1010_s26 }
 0x181   : > { %p1013_p1 = scmp.lt.s32.totalorder %s1011_s29, %s1005_s16 }
 0x183   : > { %p1014_p2 = por %p1013_p1, %p1012_p0 }
 0x185   : > { %p1015_p3 = pnand %p1014_p2, %p1008_p13 }
 0x1f0   : > { %v556_v5 = vpop.permute.xlu1 %555  ;;  %v552_v6 = vpop.permute.xlu0 %551 }
 0x1f1   : > { %v558_v8 = vsel %vm418_vm3, %v545_v7, %v552_v6 }
 0x1f2   : > { %v560_v9 = vsel %vm559_vm9, %v558_v8, %v556_v5 }
 0x1f3   : > { %917 = vmatmul.mubr.msk.f32.vlgmr.msra.gmra.mrb[0].mxu1 %vm573_vm10, %v560_v9 }
 0x2c6   : > { %v643_v16 = vpop.f32.mrb[0].mxu1 }
 0x2c7   : > { %v654_v19 = vmul.f32 %v843_v15, %v643_v16  ;;  %v918_v20 = vpop.f32.mrb[1].mxu1 }
 0x2c9   : > { %v662_v21 = vadd.f32 %v844_v17, %v654_v19 }
 0x2cb   : > { %v756_v22 = vadd.f32 %v755_v18, %v662_v21 }
 0x2cd   : > { %757 = vst.msk [vmem:[%s379_s13] sm:$0xff] %vm418_vm3, %v756_v22 }
 0x2ce   : > { %1018 = shalt.err (!%p1015_p3)
}
 0x2cf   : > { %s1019_s15 = scalar_lea.hbm %s1296_s0, 128  ;;  %s1023_s13 = scalar_lea.hbm %s1350_s11, 256 }
 0x2d0   : > { %p1020_p4 = scmp.ne.s32.totalorder %s1296_s0, %s1019_s15  ;;  %p1024_p9 = scmp.lt.u32.totalorder %s1296_s0, %s1350_s11 }
 0x2d1   : > { %p1025_p10 = scmp.lt.u32.totalorder %s1023_s13, %s1019_s15  ;;  %p1027_p12 = scmp.lt.u32.totalorder %s1019_s15, %s1296_s0 }
 0x2d2   : > { %p1021_p7 = pnand %p1020_p4, %p1174_p5 }
 0x2d3   : > { %p1026_p11 = por %p1025_p10, %p1024_p9 }
 0x2d4   : > { %p1022_p8 = pneg %p1021_p7 }
 0x2d5   : > { %p1028_p13 = por %p1027_p12, %p1026_p11 }
 0x2d7   : > { %p1029_p0 = pnand %p1028_p13, %p1022_p8 }
 0x2d9   : > { %1032 = shalt.err (!%p1029_p0)
}
 0x2da   : > { %960 = dma.vmem_to_hbm [thread:$0]  (%p1174_p5), %s1298_s14, 128, %s1296_s0, %s759_s25  }
 0x2db PF: > { %p966_p1 = scmp.ge.s32.totalorder %s1067_s20, 2  ;;  %s784_s16 = sand.u32 1, %s1055_s17  }
 0x2dc   : > { %s785_s21 = scalar_lea.sflag [#allocation4], %s784_s16 }
 0x2dd   : > { %p963_p2 = pnand %p966_p1, %p1178_p6 }
 0x2df   : > { %1050 = dma.done.wait (!%p963_p2), %s785_s21, 128  }
 0x2e0   : > { %1052 = vsyncadd (!%p963_p2), %s785_s21, 4294967168  ;;  %s1358_s26 = sld [smem:[#allocation6_spill]]  ;;  %p21_p3 = scmp.ge.s32.totalorder %s1161_s23, 4  }
 0x2e1   : > { %s1359_s17 = smov %s1059_s18  ;;  %s1360_s18 = smov %s1063_s19 }
 0x2e2   : > { %s1362_s20 = smov %s1161_s23  ;;  %23 = sbr.rel (!%p21_p3) target bundleno = 5 (0x5), region = 102 }
 0x2e6   : > { %s1361_s19 = smov %s1358_s26 }
 0x2e9   :  { %790 = vsyncpa [#allocation4], 1 }
 0x2ea   :  { %792 = vsyncpa [#allocation4 + $0x1], 1 }

</bundles_post_ra>
